<compile_context>
chip_gen: v7x
topology: tpu7x:2x2x1
jax: 0.10.0
libtpu: 0.0.40
codegen_flags: <defaults>
</compile_context>

<pallas_src>
import numpy as np
import jax
import jax.numpy as jnp
from jax.experimental import pallas as pl
from jax.experimental.pallas import tpu as pltpu


def _round_up(x, m):
    return ((x + m - 1) // m) * m


def _masked_gram_kernel(glab_ref, lat_ref, lab_ref, out_ref, acc_ref):
    """One grid step = (group block gb, batch tile k).

    glab_ref : (G_pad,) int32 in SMEM  — per-group label values (scalar prefetch)
    lat_ref  : (tN, D)  f32            — batch tile of latents
    lab_ref  : (tN, 1)  int32          — batch tile of labels
    out_ref  : (GB, D, D) f32          — masked Gram matrices for this group block
    acc_ref  : (GB, D, D) f32 VMEM scratch accumulator
    """
    gb = pl.program_id(0)
    k = pl.program_id(1)

    @pl.when(k == 0)
    def _init():
        acc_ref[...] = jnp.zeros_like(acc_ref)

    x = lat_ref[...]                      # (tN, D) f32
    lab = lab_ref[...]                    # (tN, 1) i32
    gb_size = acc_ref.shape[0]

    # Static (fully unrolled) loop over the groups in this block; GB is small.
    for g in range(gb_size):
        gl = glab_ref[gb * gb_size + g]                     # scalar from SMEM
        m = jnp.where(lab == gl, 1.0, 0.0).astype(jnp.float32)  # (tN, 1)
        # One-sided mask: (x*m)^T @ x == sum_i m_i x_i x_i^T   (m is 0/1).
        # Contraction over the batch axis feeds the MXU; accumulate in f32.
        gram = jax.lax.dot_general(
            x * m, x,
            dimension_numbers=(((0,), (0,)), ((), ())),
            preferred_element_type=jnp.float32,
        )                                                    # (D, D)
        acc_ref[g, :, :] = acc_ref[g, :, :] + gram

    @pl.when(k == pl.num_programs(1) - 1)
    def _store():
        out_ref[...] = acc_ref[...]


def masked_gram_pallas(group_labels, latents, labels, *, groups_per_block, block_n):
    """group_labels: (G_pad,) i32, latents: (N_pad, D) f32, labels: (N_pad, 1) i32
    -> (G_pad, D, D) f32 masked (uncentered) Gram matrices."""
    n_pad, d = latents.shape
    g_pad = group_labels.shape[0]
    gb = groups_per_block
    grid = (g_pad // gb, n_pad // block_n)

    return pl.pallas_call(
        _masked_gram_kernel,
        out_shape=jax.ShapeDtypeStruct((g_pad, d, d), jnp.float32),
        grid_spec=pltpu.PrefetchScalarGridSpec(
            num_scalar_prefetch=1,          # group_labels -> SMEM
            grid=grid,
            in_specs=[
                pl.BlockSpec((block_n, d), lambda gi, k, glab: (k, 0)),
                pl.BlockSpec((block_n, 1), lambda gi, k, glab: (k, 0)),
            ],
            out_specs=pl.BlockSpec((gb, d, d), lambda gi, k, glab: (gi, 0, 0)),
            scratch_shapes=[pltpu.VMEM((gb, d, d), jnp.float32)],
        ),
        compiler_params=pltpu.CompilerParams(
            # group-block axis parallel (megacore), batch-tile axis is the
            # reduction for the VMEM accumulator -> arbitrary, last.
            dimension_semantics=("parallel", "arbitrary")),
    )(group_labels, latents, labels)


def whiten_loss(latents, batch_label, *, block_n=512, groups_per_block=8):
    """Full WhitenLoss.forward.

    Unique labels are resolved on host (data-dependent, matches torch.unique);
    the group count is padded to a multiple of `groups_per_block` so the Pallas
    grid shape stays stable across batches.
    """
    latents = jnp.asarray(latents, jnp.float32)
    batch_label = jnp.asarray(batch_label, jnp.int32)
    N, D = latents.shape

    labels_np = np.unique(np.asarray(batch_label)).astype(np.int32)
    G = int(labels_np.shape[0])
    GB = groups_per_block
    G_pad = _round_up(max(G, 1), GB)
    # Padding groups get label -1, padded batch rows get label -2 (real labels
    # are assumed >= 0), so padding never matches anything.
    glab_np = np.full((G_pad,), -1, dtype=np.int32)
    glab_np[:G] = labels_np
    glab = jnp.asarray(glab_np)

    # Pad / tile the batch axis.
    tN = min(block_n, _round_up(N, 8))
    N_pad = _round_up(N, tN)
    lat_p = jnp.zeros((N_pad, D), jnp.float32).at[:N].set(latents)
    lab_p = jnp.full((N_pad, 1), -2, jnp.int32).at[:N, 0].set(batch_label)

    # Heavy O(N*D^2) part on the MXU inside Pallas.
    S = masked_gram_pallas(glab, lat_p, lab_p,
                           groups_per_block=GB, block_n=tN)      # (G_pad, D, D)

    # Cheap O(G*N + G*D^2) finalize in plain JAX (mask/count/mean, rank-1
    # correction, regularizer, trace, slogdet).
    masks = (batch_label[None, :] == glab[:, None]).astype(jnp.float32)   # (G_pad, N)
    counts = jnp.sum(masks, axis=1)                                       # (G_pad,)
    sums = masks @ latents                                                # (G_pad, D)

    n = counts
    mu = sums / jnp.maximum(n, 1.0)[:, None]                              # (G_pad, D)
    sigma = (S - n[:, None, None] * mu[:, :, None] * mu[:, None, :]) \
            / jnp.maximum(n - 1.0, 1.0)[:, None, None]
    sigma = sigma + 0.1 * jnp.eye(D, dtype=jnp.float32)

    trace = jnp.trace(sigma, axis1=1, axis2=2)                            # (G_pad,)
    # TODO(synk): torch.slogdet has no Pallas TPU equivalent; done with jnp.linalg.
    _, logdet = jnp.linalg.slogdet(sigma)                                 # (G_pad,)

    per_group = trace - logdet
    valid = counts > 1.5   # PyTorch skips groups with <= 1 sample; also drops padding
    return jnp.sum(jnp.where(valid, per_group, 0.0)) * 0.01


def whiten_loss_ref(latents, batch_label):
    """Pure-numpy float64 reference (same math as the PyTorch module)."""
    labels_np = np.unique(np.asarray(batch_label))
    loss = 0.0
    lat = np.asarray(latents, dtype=np.float64)
    lab = np.asarray(batch_label)
    for L in labels_np:
        Z = lat[lab == L]
        n = Z.shape[0]
        if n > 1:
            mu = Z.mean(axis=0, keepdims=True)
            delta = Z - mu
            sigma = delta.T @ delta / (n - 1) + 0.1 * np.eye(Z.shape[1])
            _, logdet = np.linalg.slogdet(sigma)
            loss = loss + np.trace(sigma) - logdet
    return loss * 0.01


if __name__ == "__main__":
    key = jax.random.PRNGKey(0)
    k1, k2 = jax.random.split(key)

    N, D = 8, 32                      # batch of latent vectors, latent dim
    latents = jax.random.normal(k1, (N, D), dtype=jnp.float32)
    batch_label = jax.random.randint(k2, (N,), 0, 3, dtype=jnp.int32)

    out = whiten_loss(latents, batch_label)
    out = jax.block_until_ready(out)

    ref = whiten_loss_ref(latents, batch_label)
    np.testing.assert_allclose(np.asarray(out), np.asarray(ref), rtol=1e-3, atol=1e-3)

    print("KERNEL_OK")
</pallas_src>

<mosaic_0001>
module attributes {stable_mosaic.version = 11 : i64} {
  func.func @_masked_gram_kernel(%arg0: i32, %arg1: i32, %arg2: memref<8xi32, #tpu.memory_space<smem>>, %arg3: memref<8x32xf32, #tpu.memory_space<vmem>>, %arg4: memref<8x1xi32, #tpu.memory_space<vmem>>, %arg5: memref<8x32x32xf32, #tpu.memory_space<vmem>>, %arg6: memref<8x32x32xf32, #tpu.memory_space<vmem>>) attributes {dimension_semantics = [#tpu.dimension_semantics<parallel>, #tpu.dimension_semantics<arbitrary>], iteration_bounds = array<i64: 1, 1>, scalar_prefetch = 1 : i64, scratch_operands = 1 : i64, tpu.core_type = #tpu.core_type<tc>, window_params = [{transform_indices = @transform_0, window_bounds = array<i64: 8, 32>}, {transform_indices = @transform_1, window_bounds = array<i64: 8, 1>}, {transform_indices = @transform_2, window_bounds = array<i64: 8, 32, 32>}]} {
    %c0_i32 = arith.constant 0 : i32
    %0 = arith.cmpi eq, %arg1, %c0_i32 : i32
    %1 = arith.extui %0 : i1 to i32
    %c0_i32_0 = arith.constant 0 : i32
    %2 = arith.cmpi ne, %1, %c0_i32_0 : i32
    scf.if %2 {
      %cst_78 = arith.constant 0.000000e+00 : f32
      %152 = vector.broadcast %cst_78 : f32 to vector<8x32x32xf32>
      %c0_79 = arith.constant 0 : index
      %c0_80 = arith.constant 0 : index
      %c0_81 = arith.constant 0 : index
      %153 = vector.load %arg6[%c0_79, %c0_80, %c0_81] : memref<8x32x32xf32, #tpu.memory_space<vmem>>, vector<8x32x32xf32>
      tpu.vector_store %arg6[%c0_79, %c0_80, %c0_81], %152 {strides = array<i32>} : memref<8x32x32xf32, #tpu.memory_space<vmem>>, vector<8x32x32xf32>,
    } else {
    }
    %c0 = arith.constant 0 : index
    %c0_1 = arith.constant 0 : index
    %3 = vector.load %arg3[%c0, %c0_1] : memref<8x32xf32, #tpu.memory_space<vmem>>, vector<8x32xf32>
    %c0_2 = arith.constant 0 : index
    %c0_3 = arith.constant 0 : index
    %4 = vector.load %arg4[%c0_2, %c0_3] : memref<8x1xi32, #tpu.memory_space<vmem>>, vector<8x1xi32>
    %c8_i32 = arith.constant 8 : i32
    %5 = arith.muli %arg0, %c8_i32 : i32
    %c0_i32_4 = arith.constant 0 : i32
    %6 = arith.addi %5, %c0_i32_4 : i32
    %7 = arith.index_cast %6 : i32 to index
    %8 = memref.load %arg2[%7] : memref<8xi32, #tpu.memory_space<smem>>
    %9 = vector.broadcast %8 : i32 to vector<8x1xi32>
    %10 = arith.cmpi eq, %4, %9 : vector<8x1xi32>
    %cst = arith.constant 1.000000e+00 : f32
    %cst_5 = arith.constant 0.000000e+00 : f32
    %11 = vector.broadcast %cst : f32 to vector<8x1xf32>
    %12 = vector.broadcast %cst_5 : f32 to vector<8x1xf32>
    %13 = arith.select %10, %11, %12 : vector<8x1xi1>, vector<8x1xf32>
    %14 = vector.broadcast %13 : vector<8x1xf32> to vector<8x32xf32>
    %15 = arith.mulf %3, %14 : vector<8x32xf32>
    %cst_6 = arith.constant dense<0.000000e+00> : vector<32x32xf32>
    %16 = tpu.matmul %15, %3, %cst_6 {dimension_numbers = #tpu.dot_dimension_numbers<[0], [0], [1], [1], [0, 1, 1, 1], [], []>} : vector<8x32xf32>, vector<8x32xf32>, vector<32x32xf32> -> vector<32x32xf32>
    %c0_7 = arith.constant 0 : index
    %c0_8 = arith.constant 0 : index
    %c0_9 = arith.constant 0 : index
    %17 = vector.load %arg6[%c0_7, %c0_8, %c0_9] : memref<8x32x32xf32, #tpu.memory_space<vmem>>, vector<1x32x32xf32>
    %18 = vector.shape_cast %17 : vector<1x32x32xf32> to vector<32x32xf32>
    %19 = arith.addf %18, %16 : vector<32x32xf32>
    %c0_10 = arith.constant 0 : index
    %c0_11 = arith.constant 0 : index
    %c0_12 = arith.constant 0 : index
    %20 = vector.load %arg6[%c0_10, %c0_11, %c0_12] : memref<8x32x32xf32, #tpu.memory_space<vmem>>, vector<1x32x32xf32>
    %21 = vector.shape_cast %20 : vector<1x32x32xf32> to vector<32x32xf32>
    %22 = vector.shape_cast %19 : vector<32x32xf32> to vector<1x32x32xf32>
    tpu.vector_store %arg6[%c0_10, %c0_11, %c0_12], %22 {strides = array<i32>} : memref<8x32x32xf32, #tpu.memory_space<vmem>>, vector<1x32x32xf32>,
    %c8_i32_13 = arith.constant 8 : i32
    %23 = arith.muli %arg0, %c8_i32_13 : i32
    %c1_i32 = arith.constant 1 : i32
    %24 = arith.addi %23, %c1_i32 : i32
    %25 = arith.index_cast %24 : i32 to index
    %26 = memref.load %arg2[%25] : memref<8xi32, #tpu.memory_space<smem>>
    %27 = vector.broadcast %26 : i32 to vector<8x1xi32>
    %28 = arith.cmpi eq, %4, %27 : vector<8x1xi32>
    %cst_14 = arith.constant 1.000000e+00 : f32
    %cst_15 = arith.constant 0.000000e+00 : f32
    %29 = vector.broadcast %cst_14 : f32 to vector<8x1xf32>
    %30 = vector.broadcast %cst_15 : f32 to vector<8x1xf32>
    %31 = arith.select %28, %29, %30 : vector<8x1xi1>, vector<8x1xf32>
    %32 = vector.broadcast %31 : vector<8x1xf32> to vector<8x32xf32>
    %33 = arith.mulf %3, %32 : vector<8x32xf32>
    %cst_16 = arith.constant dense<0.000000e+00> : vector<32x32xf32>
    %34 = tpu.matmul %33, %3, %cst_16 {dimension_numbers = #tpu.dot_dimension_numbers<[0], [0], [1], [1], [0, 1, 1, 1], [], []>} : vector<8x32xf32>, vector<8x32xf32>, vector<32x32xf32> -> vector<32x32xf32>
    %c1 = arith.constant 1 : index
    %c0_17 = arith.constant 0 : index
    %c0_18 = arith.constant 0 : index
    %35 = vector.load %arg6[%c1, %c0_17, %c0_18] : memref<8x32x32xf32, #tpu.memory_space<vmem>>, vector<1x32x32xf32>
    %36 = vector.shape_cast %35 : vector<1x32x32xf32> to vector<32x32xf32>
    %37 = arith.addf %36, %34 : vector<32x32xf32>
    %c1_19 = arith.constant 1 : index
    %c0_20 = arith.constant 0 : index
    %c0_21 = arith.constant 0 : index
    %38 = vector.load %arg6[%c1_19, %c0_20, %c0_21] : memref<8x32x32xf32, #tpu.memory_space<vmem>>, vector<1x32x32xf32>
    %39 = vector.shape_cast %38 : vector<1x32x32xf32> to vector<32x32xf32>
    %40 = vector.shape_cast %37 : vector<32x32xf32> to vector<1x32x32xf32>
    tpu.vector_store %arg6[%c1_19, %c0_20, %c0_21], %40 {strides = array<i32>} : memref<8x32x32xf32, #tpu.memory_space<vmem>>, vector<1x32x32xf32>,
    %c8_i32_22 = arith.constant 8 : i32
    %41 = arith.muli %arg0, %c8_i32_22 : i32
    %c2_i32 = arith.constant 2 : i32
    %42 = arith.addi %41, %c2_i32 : i32
    %43 = arith.index_cast %42 : i32 to index
    %44 = memref.load %arg2[%43] : memref<8xi32, #tpu.memory_space<smem>>
    %45 = vector.broadcast %44 : i32 to vector<8x1xi32>
    %46 = arith.cmpi eq, %4, %45 : vector<8x1xi32>
    %cst_23 = arith.constant 1.000000e+00 : f32
    %cst_24 = arith.constant 0.000000e+00 : f32
    %47 = vector.broadcast %cst_23 : f32 to vector<8x1xf32>
    %48 = vector.broadcast %cst_24 : f32 to vector<8x1xf32>
    %49 = arith.select %46, %47, %48 : vector<8x1xi1>, vector<8x1xf32>
    %50 = vector.broadcast %49 : vector<8x1xf32> to vector<8x32xf32>
    %51 = arith.mulf %3, %50 : vector<8x32xf32>
    %cst_25 = arith.constant dense<0.000000e+00> : vector<32x32xf32>
    %52 = tpu.matmul %51, %3, %cst_25 {dimension_numbers = #tpu.dot_dimension_numbers<[0], [0], [1], [1], [0, 1, 1, 1], [], []>} : vector<8x32xf32>, vector<8x32xf32>, vector<32x32xf32> -> vector<32x32xf32>
    %c2 = arith.constant 2 : index
    %c0_26 = arith.constant 0 : index
    %c0_27 = arith.constant 0 : index
    %53 = vector.load %arg6[%c2, %c0_26, %c0_27] : memref<8x32x32xf32, #tpu.memory_space<vmem>>, vector<1x32x32xf32>
    %54 = vector.shape_cast %53 : vector<1x32x32xf32> to vector<32x32xf32>
    %55 = arith.addf %54, %52 : vector<32x32xf32>
    %c2_28 = arith.constant 2 : index
    %c0_29 = arith.constant 0 : index
    %c0_30 = arith.constant 0 : index
    %56 = vector.load %arg6[%c2_28, %c0_29, %c0_30] : memref<8x32x32xf32, #tpu.memory_space<vmem>>, vector<1x32x32xf32>
    %57 = vector.shape_cast %56 : vector<1x32x32xf32> to vector<32x32xf32>
    %58 = vector.shape_cast %55 : vector<32x32xf32> to vector<1x32x32xf32>
    tpu.vector_store %arg6[%c2_28, %c0_29, %c0_30], %58 {strides = array<i32>} : memref<8x32x32xf32, #tpu.memory_space<vmem>>, vector<1x32x32xf32>,
    %c8_i32_31 = arith.constant 8 : i32
    %59 = arith.muli %arg0, %c8_i32_31 : i32
    %c3_i32 = arith.constant 3 : i32
    %60 = arith.addi %59, %c3_i32 : i32
    %61 = arith.index_cast %60 : i32 to index
    %62 = memref.load %arg2[%61] : memref<8xi32, #tpu.memory_space<smem>>
    %63 = vector.broadcast %62 : i32 to vector<8x1xi32>
    %64 = arith.cmpi eq, %4, %63 : vector<8x1xi32>
    %cst_32 = arith.constant 1.000000e+00 : f32
    %cst_33 = arith.constant 0.000000e+00 : f32
    %65 = vector.broadcast %cst_32 : f32 to vector<8x1xf32>
    %66 = vector.broadcast %cst_33 : f32 to vector<8x1xf32>
    %67 = arith.select %64, %65, %66 : vector<8x1xi1>, vector<8x1xf32>
    %68 = vector.broadcast %67 : vector<8x1xf32> to vector<8x32xf32>
    %69 = arith.mulf %3, %68 : vector<8x32xf32>
    %cst_34 = arith.constant dense<0.000000e+00> : vector<32x32xf32>
    %70 = tpu.matmul %69, %3, %cst_34 {dimension_numbers = #tpu.dot_dimension_numbers<[0], [0], [1], [1], [0, 1, 1, 1], [], []>} : vector<8x32xf32>, vector<8x32xf32>, vector<32x32xf32> -> vector<32x32xf32>
    %c3 = arith.constant 3 : index
    %c0_35 = arith.constant 0 : index
    %c0_36 = arith.constant 0 : index
    %71 = vector.load %arg6[%c3, %c0_35, %c0_36] : memref<8x32x32xf32, #tpu.memory_space<vmem>>, vector<1x32x32xf32>
    %72 = vector.shape_cast %71 : vector<1x32x32xf32> to vector<32x32xf32>
    %73 = arith.addf %72, %70 : vector<32x32xf32>
    %c3_37 = arith.constant 3 : index
    %c0_38 = arith.constant 0 : index
    %c0_39 = arith.constant 0 : index
    %74 = vector.load %arg6[%c3_37, %c0_38, %c0_39] : memref<8x32x32xf32, #tpu.memory_space<vmem>>, vector<1x32x32xf32>
    %75 = vector.shape_cast %74 : vector<1x32x32xf32> to vector<32x32xf32>
    %76 = vector.shape_cast %73 : vector<32x32xf32> to vector<1x32x32xf32>
    tpu.vector_store %arg6[%c3_37, %c0_38, %c0_39], %76 {strides = array<i32>} : memref<8x32x32xf32, #tpu.memory_space<vmem>>, vector<1x32x32xf32>,
    %c8_i32_40 = arith.constant 8 : i32
    %77 = arith.muli %arg0, %c8_i32_40 : i32
    %c4_i32 = arith.constant 4 : i32
    %78 = arith.addi %77, %c4_i32 : i32
    %79 = arith.index_cast %78 : i32 to index
    %80 = memref.load %arg2[%79] : memref<8xi32, #tpu.memory_space<smem>>
    %81 = vector.broadcast %80 : i32 to vector<8x1xi32>
    %82 = arith.cmpi eq, %4, %81 : vector<8x1xi32>
    %cst_41 = arith.constant 1.000000e+00 : f32
    %cst_42 = arith.constant 0.000000e+00 : f32
    %83 = vector.broadcast %cst_41 : f32 to vector<8x1xf32>
    %84 = vector.broadcast %cst_42 : f32 to vector<8x1xf32>
    %85 = arith.select %82, %83, %84 : vector<8x1xi1>, vector<8x1xf32>
    %86 = vector.broadcast %85 : vector<8x1xf32> to vector<8x32xf32>
    %87 = arith.mulf %3, %86 : vector<8x32xf32>
    %cst_43 = arith.constant dense<0.000000e+00> : vector<32x32xf32>
    %88 = tpu.matmul %87, %3, %cst_43 {dimension_numbers = #tpu.dot_dimension_numbers<[0], [0], [1], [1], [0, 1, 1, 1], [], []>} : vector<8x32xf32>, vector<8x32xf32>, vector<32x32xf32> -> vector<32x32xf32>
    %c4 = arith.constant 4 : index
    %c0_44 = arith.constant 0 : index
    %c0_45 = arith.constant 0 : index
    %89 = vector.load %arg6[%c4, %c0_44, %c0_45] : memref<8x32x32xf32, #tpu.memory_space<vmem>>, vector<1x32x32xf32>
    %90 = vector.shape_cast %89 : vector<1x32x32xf32> to vector<32x32xf32>
    %91 = arith.addf %90, %88 : vector<32x32xf32>
    %c4_46 = arith.constant 4 : index
    %c0_47 = arith.constant 0 : index
    %c0_48 = arith.constant 0 : index
    %92 = vector.load %arg6[%c4_46, %c0_47, %c0_48] : memref<8x32x32xf32, #tpu.memory_space<vmem>>, vector<1x32x32xf32>
    %93 = vector.shape_cast %92 : vector<1x32x32xf32> to vector<32x32xf32>
    %94 = vector.shape_cast %91 : vector<32x32xf32> to vector<1x32x32xf32>
    tpu.vector_store %arg6[%c4_46, %c0_47, %c0_48], %94 {strides = array<i32>} : memref<8x32x32xf32, #tpu.memory_space<vmem>>, vector<1x32x32xf32>,
    %c8_i32_49 = arith.constant 8 : i32
    %95 = arith.muli %arg0, %c8_i32_49 : i32
    %c5_i32 = arith.constant 5 : i32
    %96 = arith.addi %95, %c5_i32 : i32
    %97 = arith.index_cast %96 : i32 to index
    %98 = memref.load %arg2[%97] : memref<8xi32, #tpu.memory_space<smem>>
    %99 = vector.broadcast %98 : i32 to vector<8x1xi32>
    %100 = arith.cmpi eq, %4, %99 : vector<8x1xi32>
    %cst_50 = arith.constant 1.000000e+00 : f32
    %cst_51 = arith.constant 0.000000e+00 : f32
    %101 = vector.broadcast %cst_50 : f32 to vector<8x1xf32>
    %102 = vector.broadcast %cst_51 : f32 to vector<8x1xf32>
    %103 = arith.select %100, %101, %102 : vector<8x1xi1>, vector<8x1xf32>
    %104 = vector.broadcast %103 : vector<8x1xf32> to vector<8x32xf32>
    %105 = arith.mulf %3, %104 : vector<8x32xf32>
    %cst_52 = arith.constant dense<0.000000e+00> : vector<32x32xf32>
    %106 = tpu.matmul %105, %3, %cst_52 {dimension_numbers = #tpu.dot_dimension_numbers<[0], [0], [1], [1], [0, 1, 1, 1], [], []>} : vector<8x32xf32>, vector<8x32xf32>, vector<32x32xf32> -> vector<32x32xf32>
    %c5 = arith.constant 5 : index
    %c0_53 = arith.constant 0 : index
    %c0_54 = arith.constant 0 : index
    %107 = vector.load %arg6[%c5, %c0_53, %c0_54] : memref<8x32x32xf32, #tpu.memory_space<vmem>>, vector<1x32x32xf32>
    %108 = vector.shape_cast %107 : vector<1x32x32xf32> to vector<32x32xf32>
    %109 = arith.addf %108, %106 : vector<32x32xf32>
    %c5_55 = arith.constant 5 : index
    %c0_56 = arith.constant 0 : index
    %c0_57 = arith.constant 0 : index
    %110 = vector.load %arg6[%c5_55, %c0_56, %c0_57] : memref<8x32x32xf32, #tpu.memory_space<vmem>>, vector<1x32x32xf32>
    %111 = vector.shape_cast %110 : vector<1x32x32xf32> to vector<32x32xf32>
    %112 = vector.shape_cast %109 : vector<32x32xf32> to vector<1x32x32xf32>
    tpu.vector_store %arg6[%c5_55, %c0_56, %c0_57], %112 {strides = array<i32>} : memref<8x32x32xf32, #tpu.memory_space<vmem>>, vector<1x32x32xf32>,
    %c8_i32_58 = arith.constant 8 : i32
    %113 = arith.muli %arg0, %c8_i32_58 : i32
    %c6_i32 = arith.constant 6 : i32
    %114 = arith.addi %113, %c6_i32 : i32
    %115 = arith.index_cast %114 : i32 to index
    %116 = memref.load %arg2[%115] : memref<8xi32, #tpu.memory_space<smem>>
    %117 = vector.broadcast %116 : i32 to vector<8x1xi32>
    %118 = arith.cmpi eq, %4, %117 : vector<8x1xi32>
    %cst_59 = arith.constant 1.000000e+00 : f32
    %cst_60 = arith.constant 0.000000e+00 : f32
    %119 = vector.broadcast %cst_59 : f32 to vector<8x1xf32>
    %120 = vector.broadcast %cst_60 : f32 to vector<8x1xf32>
    %121 = arith.select %118, %119, %120 : vector<8x1xi1>, vector<8x1xf32>
    %122 = vector.broadcast %121 : vector<8x1xf32> to vector<8x32xf32>
    %123 = arith.mulf %3, %122 : vector<8x32xf32>
    %cst_61 = arith.constant dense<0.000000e+00> : vector<32x32xf32>
    %124 = tpu.matmul %123, %3, %cst_61 {dimension_numbers = #tpu.dot_dimension_numbers<[0], [0], [1], [1], [0, 1, 1, 1], [], []>} : vector<8x32xf32>, vector<8x32xf32>, vector<32x32xf32> -> vector<32x32xf32>
    %c6 = arith.constant 6 : index
    %c0_62 = arith.constant 0 : index
    %c0_63 = arith.constant 0 : index
    %125 = vector.load %arg6[%c6, %c0_62, %c0_63] : memref<8x32x32xf32, #tpu.memory_space<vmem>>, vector<1x32x32xf32>
    %126 = vector.shape_cast %125 : vector<1x32x32xf32> to vector<32x32xf32>
    %127 = arith.addf %126, %124 : vector<32x32xf32>
    %c6_64 = arith.constant 6 : index
    %c0_65 = arith.constant 0 : index
    %c0_66 = arith.constant 0 : index
    %128 = vector.load %arg6[%c6_64, %c0_65, %c0_66] : memref<8x32x32xf32, #tpu.memory_space<vmem>>, vector<1x32x32xf32>
    %129 = vector.shape_cast %128 : vector<1x32x32xf32> to vector<32x32xf32>
    %130 = vector.shape_cast %127 : vector<32x32xf32> to vector<1x32x32xf32>
    tpu.vector_store %arg6[%c6_64, %c0_65, %c0_66], %130 {strides = array<i32>} : memref<8x32x32xf32, #tpu.memory_space<vmem>>, vector<1x32x32xf32>,
    %c8_i32_67 = arith.constant 8 : i32
    %131 = arith.muli %arg0, %c8_i32_67 : i32
    %c7_i32 = arith.constant 7 : i32
    %132 = arith.addi %131, %c7_i32 : i32
    %133 = arith.index_cast %132 : i32 to index
    %134 = memref.load %arg2[%133] : memref<8xi32, #tpu.memory_space<smem>>
    %135 = vector.broadcast %134 : i32 to vector<8x1xi32>
    %136 = arith.cmpi eq, %4, %135 : vector<8x1xi32>
    %cst_68 = arith.constant 1.000000e+00 : f32
    %cst_69 = arith.constant 0.000000e+00 : f32
    %137 = vector.broadcast %cst_68 : f32 to vector<8x1xf32>
    %138 = vector.broadcast %cst_69 : f32 to vector<8x1xf32>
    %139 = arith.select %136, %137, %138 : vector<8x1xi1>, vector<8x1xf32>
    %140 = vector.broadcast %139 : vector<8x1xf32> to vector<8x32xf32>
    %141 = arith.mulf %3, %140 : vector<8x32xf32>
    %cst_70 = arith.constant dense<0.000000e+00> : vector<32x32xf32>
    %142 = tpu.matmul %141, %3, %cst_70 {dimension_numbers = #tpu.dot_dimension_numbers<[0], [0], [1], [1], [0, 1, 1, 1], [], []>} : vector<8x32xf32>, vector<8x32xf32>, vector<32x32xf32> -> vector<32x32xf32>
    %c7 = arith.constant 7 : index
    %c0_71 = arith.constant 0 : index
    %c0_72 = arith.constant 0 : index
    %143 = vector.load %arg6[%c7, %c0_71, %c0_72] : memref<8x32x32xf32, #tpu.memory_space<vmem>>, vector<1x32x32xf32>
    %144 = vector.shape_cast %143 : vector<1x32x32xf32> to vector<32x32xf32>
    %145 = arith.addf %144, %142 : vector<32x32xf32>
    %c7_73 = arith.constant 7 : index
    %c0_74 = arith.constant 0 : index
    %c0_75 = arith.constant 0 : index
    %146 = vector.load %arg6[%c7_73, %c0_74, %c0_75] : memref<8x32x32xf32, #tpu.memory_space<vmem>>, vector<1x32x32xf32>
    %147 = vector.shape_cast %146 : vector<1x32x32xf32> to vector<32x32xf32>
    %148 = vector.shape_cast %145 : vector<32x32xf32> to vector<1x32x32xf32>
    tpu.vector_store %arg6[%c7_73, %c0_74, %c0_75], %148 {strides = array<i32>} : memref<8x32x32xf32, #tpu.memory_space<vmem>>, vector<1x32x32xf32>,
    %c0_i32_76 = arith.constant 0 : i32
    %149 = arith.cmpi eq, %arg1, %c0_i32_76 : i32
    %150 = arith.extui %149 : i1 to i32
    %c0_i32_77 = arith.constant 0 : i32
    %151 = arith.cmpi ne, %150, %c0_i32_77 : i32
    scf.if %151 {
      %c0_78 = arith.constant 0 : index
      %c0_79 = arith.constant 0 : index
      %c0_80 = arith.constant 0 : index
      %152 = vector.load %arg6[%c0_78, %c0_79, %c0_80] : memref<8x32x32xf32, #tpu.memory_space<vmem>>, vector<8x32x32xf32>
      %c0_81 = arith.constant 0 : index
      %c0_82 = arith.constant 0 : index
      %c0_83 = arith.constant 0 : index
      %153 = vector.load %arg5[%c0_81, %c0_82, %c0_83] : memref<8x32x32xf32, #tpu.memory_space<vmem>>, vector<8x32x32xf32>
      tpu.vector_store %arg5[%c0_81, %c0_82, %c0_83], %152 {strides = array<i32>} : memref<8x32x32xf32, #tpu.memory_space<vmem>>, vector<8x32x32xf32>,
    } else {
    }
    return
  }
  func.func @transform_0(%arg0: i32, %arg1: i32, %arg2: memref<8xi32, #tpu.memory_space<smem>>) -> (i32, i32) {
    %c0_i32 = arith.constant 0 : i32
    %c0_i32_0 = arith.constant 0 : i32
    return %arg1, %c0_i32 : i32, i32
  }
  func.func @transform_1(%arg0: i32, %arg1: i32, %arg2: memref<8xi32, #tpu.memory_space<smem>>) -> (i32, i32) {
    %c0_i32 = arith.constant 0 : i32
    %c0_i32_0 = arith.constant 0 : i32
    return %arg1, %c0_i32 : i32, i32
  }
  func.func @transform_2(%arg0: i32, %arg1: i32, %arg2: memref<8xi32, #tpu.memory_space<smem>>) -> (i32, i32, i32) {
    %c0_i32 = arith.constant 0 : i32
    %c0_i32_0 = arith.constant 0 : i32
    %c0_i32_1 = arith.constant 0 : i32
    return %arg0, %c0_i32, %c0_i32_0 : i32, i32, i32
  }
}

</mosaic_0001>

<bundles_post_ra>
// kernel: tpu_custom_call.1
= control target key start
LH: loop header
LB: loop body
LE: loop exit
PB: predicated region body
PF: predicated region fallthrough
CT: control target
= control target key end

     0   :  { %s1816_s0 = inlined_call_operand.vmem [shape: s32[8], index: 0, kind: input, shape index: {}]   ;;  %s1817_s1 = inlined_call_operand.vmem [shape: f32[8,32], index: 1, kind: input, shape index: {}]   ;;  %s1818_s2 = inlined_call_operand.vmem [shape: s32[8,1], index: 2, kind: input, shape index: {}]   ;;  %s1819_s3 = inlined_call_operand.hbm [shape: f32[8,32,32], index: 3, kind: output, shape index: {}]  }
   0x1   :  { %s8_s14 = sshll.u32 %s1816_s0, 4  ;;  %s9_s14 = int_to_ptr.vmem [resolvable:$true] %s8_s14 }
   0x2   :  { %s1537_s15 = scalar_lea.vmem %s9_s14, 16  ;;  %p1542_p1 = scmp.lt.s32.totalorder %s9_s14, %s9_s14 }
   0x3   :  { %p1538_p0 = scmp.ne.s32.totalorder %s9_s14, %s1537_s15  ;;  %p1543_p2 = scmp.lt.s32.totalorder %s1537_s15, %s1537_s15 }
   0x5   :  { %p1544_p3 = por %p1543_p2, %p1542_p1 }
   0x7   :  { %p1545_p4 = pnand %p1544_p3, %p1538_p0 }
   0x9   :  { %1548 = shalt.err (!%p1545_p4)  }
   0xa   :  { %s1575_s16 = smov [#allocation4]  }
   0xb   :  { %11 = dma.vmem_to_smem %s9_s14, 16, %s1575_s16, [#allocation3] }
   0xc   :  { %1571 = dma.done.wait [#allocation3], 16 }
   0xd   :  { %1572 = vsyncadd [#allocation3], 4294967280 }
   0xe   :  { %13 = sfence }
   0xf   :  { %s59_s17 = sld [smem:[#allocation4]]  ;;  %v1607_v0 = vld [vmem:[%s1817_s1] sm:$0xff]  ;;  %v1576_v1 = vmov 0   ;;  %s1370_s0 = sld [smem:[#allocation4 + $0x1]] }
  0x10   :  { %1515 = vset.pattern.permute.xlu0 %v1576_v1  ;;  %s1375_s20 = sld [smem:[#allocation4 + $0x2]]  ;;  %1526 = vset.pattern.permute.xlu1 %v1576_v1 }
  0x11   :  { %14 = vsyncpa [#allocation6], 0  ;;  %s1380_s21 = sld [smem:[#allocation4 + $0x3]]  ;;  %s1385_s22 = sld [smem:[#allocation4 + $0x4]]  ;;  %1445 = vmatprep.subr.mxu0 %v1607_v0  ;;  %1453 = vmatprep.subr.mxu1 %v1607_v0  ;;  %v57_v2 = vld [vmem:[%s1818_s2] sm:$0xff]  ;;  %v1577_v6 = vmov 0.0  }
  0x12   :  { %s1390_s23 = sld [smem:[#allocation4 + $0x5]]  ;;  %s1395_s24 = sld [smem:[#allocation4 + $0x6]]  ;;  %1446 = vmatpush3.msra.mxu0 %v1607_v0  ;;  %1454 = vmatpush3.msra.mxu1 %v1607_v0  ;;  %vm23_vm8 = vcmask 261120   ;;  %vm101_vm9 = vcmask 64512  }
  0x13   :  { %s1400_s26 = sld [smem:[#allocation4 + $0x7]]  ;;  %1461 = vmatprep.subr.mxu0 %v1607_v0  ;;  %1469 = vmatprep.subr.mxu1 %v1607_v0  ;;  %25 = vst.msk [vmem:[#allocation2 + $0x8] sm:$0xff] %vm23_vm8, %v1577_v6  ;;  %24 = vst.msk [vmem:[#allocation2] sm:$0xff] %vm23_vm8, %v1577_v6  ;;  %s1578_s2 = smov [#allocation5]  }
  0x14   :  { %26 = vst.msk [vmem:[#allocation2 + $0x10] sm:$0xff] %vm23_vm8, %v1577_v6  ;;  %27 = vst.msk [vmem:[#allocation2 + $0x18] sm:$0xff] %vm23_vm8, %v1577_v6  ;;  %s1355_s27 = sshll.u32 %s1578_s2, 4  ;;  %s1356_s27 = int_to_ptr.vmem [resolvable:$true] %s1355_s27 }
  0x15   :  { %v60_v3 = vstv %s59_s17  ;;  %v214_v4 = vstv %s1370_s0  ;;  %28 = vst.msk [vmem:[#allocation2 + $0x20] sm:$0xff] %vm23_vm8, %v1577_v6  ;;  %29 = vst.msk [vmem:[#allocation2 + $0x28] sm:$0xff] %vm23_vm8, %v1577_v6  ;;  %s1549_s28 = scalar_lea.vmem %s1356_s27, 4096  ;;  %p1554_p6 = scmp.lt.s32.totalorder %s1356_s27, %s1356_s27 }
  0x16   :  { %vm61_vm0 = vcmp.eq.s32.totalorder %v57_v2, %v60_v3  ;;  %v367_v5 = vstv %s1375_s20  ;;  %vm215_vm1 = vcmp.eq.s32.totalorder %v57_v2, %v214_v4  ;;  %30 = vst.msk [vmem:[#allocation2 + $0x30] sm:$0xff] %vm23_vm8, %v1577_v6  ;;  %31 = vst.msk [vmem:[#allocation2 + $0x38] sm:$0xff] %vm23_vm8, %v1577_v6  ;;  %p1550_p5 = scmp.ne.s32.totalorder %s1356_s27, %s1549_s28  ;;  %p1555_p7 = scmp.lt.s32.totalorder %s1549_s28, %s1549_s28 }
  0x17   :  { %v62_v7 = vsel %vm61_vm0, 1.0, %v1577_v6  ;;  %vm368_vm2 = vcmp.eq.s32.totalorder %v57_v2, %v367_v5  ;;  %v520_v8 = vstv %s1380_s21  ;;  %v216_v9 = vsel %vm215_vm1, 1.0, %v1577_v6  ;;  %32 = vst.msk [vmem:[#allocation2 + $0x40] sm:$0xff] %vm23_vm8, %v1577_v6  ;;  %33 = vst.msk [vmem:[#allocation2 + $0x48] sm:$0xff] %vm23_vm8, %v1577_v6 }
  0x18   :  { %v369_v10 = vsel %vm368_vm2, 1.0, %v1577_v6  ;;  %vm521_vm3 = vcmp.eq.s32.totalorder %v57_v2, %v520_v8  ;;  %v673_v11 = vstv %s1385_s22  ;;  %v1516_v12 = vpack.i.bf16 %v216_v9, %v62_v7  ;;  %34 = vst.msk [vmem:[#allocation2 + $0x50] sm:$0xff] %vm23_vm8, %v1577_v6  ;;  %35 = vst.msk [vmem:[#allocation2 + $0x58] sm:$0xff] %vm23_vm8, %v1577_v6  ;;  %p1556_p8 = por %p1555_p7, %p1554_p6 }
  0x19   :  { %v522_v13 = vsel %vm521_vm3, 1.0, %v1577_v6  ;;  %vm674_vm4 = vcmp.eq.s32.totalorder %v57_v2, %v673_v11  ;;  %v826_v14 = vstv %s1390_s23  ;;  %v979_v16 = vstv %s1395_s24  ;;  %36 = vst.msk [vmem:[#allocation2 + $0x60] sm:$0xff] %vm23_vm8, %v1577_v6  ;;  %37 = vst.msk [vmem:[#allocation2 + $0x68] sm:$0xff] %vm23_vm8, %v1577_v6 }
  0x1a   :  { %v675_v15 = vsel %vm674_vm4, 1.0, %v1577_v6  ;;  %vm827_vm5 = vcmp.eq.s32.totalorder %v57_v2, %v826_v14  ;;  %1517 = vperm.xlu0 %1515, %v1516_v12   ;;  %v1521_v17 = vpack.i.bf16 %v522_v13, %v369_v10  ;;  %vm980_vm6 = vcmp.eq.s32.totalorder %v57_v2, %v979_v16  ;;  %38 = vst.msk [vmem:[#allocation2 + $0x70] sm:$0xff] %vm23_vm8, %v1577_v6  ;;  %v200_v12 = vld [vmem:[#allocation2 + $0x8] sm:$0xff]  ;;  %v199_v14 = vld [vmem:[#allocation2] sm:$0xff]  ;;  %p1557_p9 = pnand %p1556_p8, %p1550_p5 }
  0x1b   :  { %v828_v18 = vsel %vm827_vm5, 1.0, %v1577_v6  ;;  %v1132_v19 = vstv %s1400_s26  ;;  %v981_v21 = vsel %vm980_vm6, 1.0, %v1577_v6  ;;  %39 = vst.msk [vmem:[#allocation2 + $0x78] sm:$0xff] %vm23_vm8, %v1577_v6  ;;  %40 = vst.msk [vmem:[#allocation2 + $0x80] sm:$0xff] %vm23_vm8, %v1577_v6 }
  0x1c   :  { %v1527_v20 = vpack.i.bf16 %v828_v18, %v675_v15  ;;  %vm1133_vm7 = vcmp.eq.s32.totalorder %v57_v2, %v1132_v19  ;;  %41 = vst.msk [vmem:[#allocation2 + $0x88] sm:$0xff] %vm23_vm8, %v1577_v6  ;;  %42 = vst.msk [vmem:[#allocation2 + $0x90] sm:$0xff] %vm23_vm8, %v1577_v6  ;;  %v354_v13 = vld [vmem:[#allocation2 + $0x28] sm:$0xff]  ;;  %v353_v15 = vld [vmem:[#allocation2 + $0x20] sm:$0xff] }
  0x1d   :  { %v1134_v22 = vsel %vm1133_vm7, 1.0, %v1577_v6  ;;  %43 = vst.msk [vmem:[#allocation2 + $0x98] sm:$0xff] %vm23_vm8, %v1577_v6  ;;  %44 = vst.msk [vmem:[#allocation2 + $0xa0] sm:$0xff] %vm23_vm8, %v1577_v6 }
  0x1e   :  { %1528 = vperm.xlu1 %1526, %v1527_v20   ;;  %v1532_v23 = vpack.i.bf16 %v1134_v22, %v981_v21  ;;  %1522 = vperm.xlu0 %1515, %v1521_v17   ;;  %45 = vst.msk [vmem:[#allocation2 + $0xa8] sm:$0xff] %vm23_vm8, %v1577_v6  ;;  %46 = vst.msk [vmem:[#allocation2 + $0xb0] sm:$0xff] %vm23_vm8, %v1577_v6 }
  0x1f   :  { %47 = vst.msk [vmem:[#allocation2 + $0xb8] sm:$0xff] %vm23_vm8, %v1577_v6  ;;  %48 = vst.msk [vmem:[#allocation2 + $0xc0] sm:$0xff] %vm23_vm8, %v1577_v6 }
  0x20   :  { %49 = vst.msk [vmem:[#allocation2 + $0xc8] sm:$0xff] %vm23_vm8, %v1577_v6  ;;  %50 = vst.msk [vmem:[#allocation2 + $0xd0] sm:$0xff] %vm23_vm8, %v1577_v6 }
  0x21   :  { %51 = vst.msk [vmem:[#allocation2 + $0xd8] sm:$0xff] %vm23_vm8, %v1577_v6  ;;  %52 = vst.msk [vmem:[#allocation2 + $0xe0] sm:$0xff] %vm23_vm8, %v1577_v6 }
  0x22   :  { %1533 = vperm.xlu1 %1526, %v1532_v23   ;;  %53 = vst.msk [vmem:[#allocation2 + $0xe8] sm:$0xff] %vm23_vm8, %v1577_v6  ;;  %54 = vst.msk [vmem:[#allocation2 + $0xf0] sm:$0xff] %vm23_vm8, %v1577_v6 }
  0x23   :  { %55 = vst.msk [vmem:[#allocation2 + $0xf8] sm:$0xff] %vm23_vm8, %v1577_v6 }
  0x99   :  { %v1518_v24 = vpop.permute.xlu0 %1517 }
  0x9a   :  { %v1520_v25 = vunpack.i.h.bf16 %v1518_v24  ;;  %v1519_v26 = vunpack.i.l.bf16 %v1518_v24  ;;  %v202_v24 = vld [vmem:[#allocation2 + $0x18] sm:$0xff] }
  0x9c   :  { %v222_v27 = vmul.f32 %v1520_v25, %v1607_v0  ;;  %v68_v28 = vmul.f32 %v1519_v26, %v1607_v0  ;;  %v356_v25 = vld [vmem:[#allocation2 + $0x38] sm:$0xff]  ;;  %v201_v26 = vld [vmem:[#allocation2 + $0x10] sm:$0xff] }
  0x9d   :  { %v1523_v29 = vpop.permute.xlu0 %1522  ;;  %v1529_v34 = vpop.permute.xlu1 %1528 }
  0x9e   :  { %223 = vxpose.xlu1.b32.start.end [1/1] (short) (narrow) %v222_v27, 32  ;;  %69 = vxpose.xlu0.b32.start.end [1/1] (short) (narrow) %v68_v28, 32  ;;  %v1525_v30 = vunpack.i.h.bf16 %v1523_v29  ;;  %v1524_v31 = vunpack.i.l.bf16 %v1523_v29  ;;  %v1531_v35 = vunpack.i.h.bf16 %v1529_v34  ;;  %v1530_v36 = vunpack.i.l.bf16 %v1529_v34  ;;  %v355_v27 = vld [vmem:[#allocation2 + $0x30] sm:$0xff] }
  0xa0   :  { %v528_v32 = vmul.f32 %v1525_v30, %v1607_v0  ;;  %v375_v33 = vmul.f32 %v1524_v31, %v1607_v0  ;;  %v834_v37 = vmul.f32 %v1531_v35, %v1607_v0  ;;  %v681_v38 = vmul.f32 %v1530_v36, %v1607_v0 }
  0xa1   :  { %v1534_v39 = vpop.permute.xlu1 %1533 }
  0xa2   :  { %v1536_v40 = vunpack.i.h.bf16 %v1534_v39  ;;  %v1535_v41 = vunpack.i.l.bf16 %v1534_v39 }
  0xa4   :  { %v1140_v42 = vmul.f32 %v1536_v40, %v1607_v0  ;;  %v987_v43 = vmul.f32 %v1535_v41, %v1607_v0  ;;  %v507_v40 = vld [vmem:[#allocation2 + $0x48] sm:$0xff] }
  0xa5   :  { %v660_v41 = vld [vmem:[#allocation2 + $0x68] sm:$0xff] }
  0xab   :  { %529 = vxpose.xlu1.b32.start.end [1/1] (short) (narrow) %v528_v32, 32  ;;  %376 = vxpose.xlu0.b32.start.end [1/1] (short) (narrow) %v375_v33, 32 }
  0xb8   :  { %835 = vxpose.xlu1.b32.start.end [1/1] (short) (narrow) %v834_v37, 32  ;;  %682 = vxpose.xlu0.b32.start.end [1/1] (short) (narrow) %v681_v38, 32 }
  0xc5   :  { %1141 = vxpose.xlu1.b32.start.end [1/1] (short) (narrow) %v1140_v42, 32  ;;  %988 = vxpose.xlu0.b32.start.end [1/1] (short) (narrow) %v987_v43, 32  ;;  %v506_v42 = vld [vmem:[#allocation2 + $0x40] sm:$0xff] }
  0xc6   :  { %v659_v43 = vld [vmem:[#allocation2 + $0x60] sm:$0xff] }
 0x11e   :  { %v239_v44 = vpop.trf.xlu1  ;;  %v85_v45 = vpop.trf.xlu0 }
 0x11f   :  { %1447 = vmatprep.mubr.msk.f32.mxu0 %vm101_vm9, %v85_v45  ;;  %1455 = vmatprep.mubr.msk.f32.mxu1 %vm101_vm9, %v239_v44 }
 0x122   :  { %v240_v46 = vpop.trf.xlu1  ;;  %v86_v47 = vpop.trf.xlu0 }
 0x123   :  { %1448 = vmatmul.mubr.msk.f32.vlgmr.msra.gmra.mrb[0].mxu0 %vm101_vm9, %v86_v47  ;;  %1456 = vmatmul.mubr.msk.f32.vlgmr.msra.gmra.mrb[0].mxu1 %vm101_vm9, %v240_v46 }
 0x124   :  { %1470 = vmatpush3.msra.mxu1 %v1607_v0  ;;  %1462 = vmatpush3.msra.mxu0 %v1607_v0 }
 0x125   :  { %1477 = vmatprep.subr.mxu0 %v1607_v0  ;;  %1485 = vmatprep.subr.mxu1 %v1607_v0 }
 0x126   :  { %v241_v48 = vpop.trf.xlu1  ;;  %v87_v49 = vpop.trf.xlu0 }
 0x127   :  { %1450 = vmatprep.mubr.msk.f32.mxu0 %vm101_vm9, %v87_v49  ;;  %1458 = vmatprep.mubr.msk.f32.mxu1 %vm101_vm9, %v241_v48 }
 0x12a   :  { %v242_v50 = vpop.trf.xlu1  ;;  %v88_v51 = vpop.trf.xlu0 }
 0x12b   :  { %1451 = vmatmul.mubr.msk.f32.gmra.mrb[2].mxu0 %vm101_vm9, %v88_v51  ;;  %1459 = vmatmul.mubr.msk.f32.gmra.mrb[2].mxu1 %vm101_vm9, %v242_v50 }
 0x12e   :  { %v545_v52 = vpop.trf.xlu1  ;;  %v392_v53 = vpop.trf.xlu0 }
 0x12f   :  { %1463 = vmatprep.mubr.msk.f32.mxu0 %vm101_vm9, %v392_v53  ;;  %1471 = vmatprep.mubr.msk.f32.mxu1 %vm101_vm9, %v545_v52 }
 0x132   :  { %v546_v54 = vpop.trf.xlu1  ;;  %v393_v55 = vpop.trf.xlu0 }
 0x133   :  { %1464 = vmatmul.mubr.msk.f32.vlgmr.msra.gmra.mrb[4].mxu0 %vm101_vm9, %v393_v55  ;;  %1472 = vmatmul.mubr.msk.f32.vlgmr.msra.gmra.mrb[4].mxu1 %vm101_vm9, %v546_v54 }
 0x134   :  { %1486 = vmatpush3.msra.mxu1 %v1607_v0  ;;  %1478 = vmatpush3.msra.mxu0 %v1607_v0 }
 0x135   :  { %1501 = vmatprep.subr.mxu1 %v1607_v0  ;;  %1493 = vmatprep.subr.mxu0 %v1607_v0 }
 0x136   :  { %v547_v56 = vpop.trf.xlu1  ;;  %v394_v57 = vpop.trf.xlu0 }
 0x137   :  { %1466 = vmatprep.mubr.msk.f32.mxu0 %vm101_vm9, %v394_v57  ;;  %1474 = vmatprep.mubr.msk.f32.mxu1 %vm101_vm9, %v547_v56  ;;  %v509_v56 = vld [vmem:[#allocation2 + $0x58] sm:$0xff] }
 0x138   :  { %v662_v57 = vld [vmem:[#allocation2 + $0x78] sm:$0xff] }
 0x13a   :  { %v548_v58 = vpop.trf.xlu1  ;;  %v395_v59 = vpop.trf.xlu0 }
 0x13b   :  { %1467 = vmatmul.mubr.msk.f32.gmra.mrb[6].mxu0 %vm101_vm9, %v395_v59  ;;  %1475 = vmatmul.mubr.msk.f32.gmra.mrb[6].mxu1 %vm101_vm9, %v548_v58  ;;  %v508_v58 = vld [vmem:[#allocation2 + $0x50] sm:$0xff] }
 0x13c   :  { %v661_v59 = vld [vmem:[#allocation2 + $0x70] sm:$0xff] }
 0x13e   :  { %v851_v60 = vpop.trf.xlu1  ;;  %v698_v61 = vpop.trf.xlu0 }
 0x13f   :  { %1479 = vmatprep.mubr.msk.f32.mxu0 %vm101_vm9, %v698_v61  ;;  %1487 = vmatprep.mubr.msk.f32.mxu1 %vm101_vm9, %v851_v60 }
 0x142   :  { %v852_v62 = vpop.trf.xlu1  ;;  %v699_v63 = vpop.trf.xlu0 }
 0x143   :  { %1480 = vmatmul.mubr.msk.f32.vlgmr.msra.gmra.mrb[8].mxu0 %vm101_vm9, %v699_v63  ;;  %1488 = vmatmul.mubr.msk.f32.vlgmr.msra.gmra.mrb[8].mxu1 %vm101_vm9, %v852_v62 }
 0x144   :  { %1494 = vmatpush3.msra.mxu0 %v1607_v0  ;;  %1502 = vmatpush3.msra.mxu1 %v1607_v0 }
 0x146   :  { %v853_v1 = vpop.trf.xlu1  ;;  %v700_v2 = vpop.trf.xlu0 }
 0x147   :  { %1482 = vmatprep.mubr.msk.f32.mxu0 %vm101_vm9, %v700_v2  ;;  %1490 = vmatprep.mubr.msk.f32.mxu1 %vm101_vm9, %v853_v1 }
 0x14a   :  { %v854_v3 = vpop.trf.xlu1  ;;  %v701_v4 = vpop.trf.xlu0 }
 0x14b   :  { %1483 = vmatmul.mubr.msk.f32.gmra.mrb[10].mxu0 %vm101_vm9, %v701_v4  ;;  %1491 = vmatmul.mubr.msk.f32.gmra.mrb[10].mxu1 %vm101_vm9, %v854_v3 }
 0x14e   :  { %v1157_v5 = vpop.trf.xlu1  ;;  %v1004_v6 = vpop.trf.xlu0 }
 0x14f   :  { %1495 = vmatprep.mubr.msk.f32.mxu0 %vm101_vm9, %v1004_v6  ;;  %1503 = vmatprep.mubr.msk.f32.mxu1 %vm101_vm9, %v1157_v5 }
 0x152   :  { %v1158_v7 = vpop.trf.xlu1  ;;  %v1005_v0 = vpop.trf.xlu0 }
 0x153   :  { %1496 = vmatmul.mubr.msk.f32.vlgmr.msra.gmra.mrb[12].mxu0 %vm101_vm9, %v1005_v0  ;;  %1504 = vmatmul.mubr.msk.f32.vlgmr.msra.gmra.mrb[12].mxu1 %vm101_vm9, %v1158_v7 }
 0x156   :  { %v1159_v8 = vpop.trf.xlu1  ;;  %v1006_v9 = vpop.trf.xlu0 }
 0x157   :  { %1498 = vmatprep.mubr.msk.f32.mxu0 %vm101_vm9, %v1006_v9  ;;  %1506 = vmatprep.mubr.msk.f32.mxu1 %vm101_vm9, %v1159_v8  ;;  %v813_v8 = vld [vmem:[#allocation2 + $0x88] sm:$0xff] }
 0x158   :  { %v966_v9 = vld [vmem:[#allocation2 + $0xa8] sm:$0xff] }
 0x15a   :  { %v1160_v10 = vpop.trf.xlu1  ;;  %v1007_v11 = vpop.trf.xlu0 }
 0x15b   :  { %1499 = vmatmul.mubr.msk.f32.gmra.mrb[14].mxu0 %vm101_vm9, %v1007_v11  ;;  %1507 = vmatmul.mubr.msk.f32.gmra.mrb[14].mxu1 %vm101_vm9, %v1160_v10  ;;  %v812_v10 = vld [vmem:[#allocation2 + $0x80] sm:$0xff] }
 0x15c   :  { %v965_v11 = vld [vmem:[#allocation2 + $0xa0] sm:$0xff] }
 0x1f6   :  { %v1449_v16 = vpop.f32.mrb[0].mxu0  ;;  %v1457_v17 = vpop.f32.mrb[0].mxu1 }
 0x1f7   :  { %v204_v18 = vadd.f32 %v1449_v16, %v200_v12  ;;  %v358_v19 = vadd.f32 %v1457_v17, %v354_v13  ;;  %v180_v20 = vpop.f32.mrb[1].mxu0  ;;  %v333_v21 = vpop.f32.mrb[1].mxu1 }
 0x1f8   :  { %v203_v22 = vadd.f32 %v199_v14, %v180_v20  ;;  %v357_v23 = vadd.f32 %v353_v15, %v333_v21 }
 0x1f9   :  { %209 = vst.msk [vmem:[#allocation2 + $0x8] sm:$0xff] %vm23_vm8, %v204_v18  ;;  %362 = vst.msk [vmem:[#allocation2 + $0x28] sm:$0xff] %vm23_vm8, %v358_v19 }
 0x1fa   :  { %208 = vst.msk [vmem:[#allocation2] sm:$0xff] %vm23_vm8, %v203_v22  ;;  %361 = vst.msk [vmem:[#allocation2 + $0x20] sm:$0xff] %vm23_vm8, %v357_v23 }
 0x1fe   :  { %v1452_v28 = vpop.f32.mrb[2].mxu0  ;;  %v1460_v29 = vpop.f32.mrb[2].mxu1 }
 0x1ff   :  { %v206_v30 = vadd.f32 %v1452_v28, %v202_v24  ;;  %v360_v31 = vadd.f32 %v1460_v29, %v356_v25  ;;  %v190_v32 = vpop.f32.mrb[3].mxu0  ;;  %v343_v33 = vpop.f32.mrb[3].mxu1  ;;  %v815_v24 = vld [vmem:[#allocation2 + $0x98] sm:$0xff] }
 0x200   :  { %v1287_v34 = vld [vmem:[#allocation2 + $0x8] sm:$0xff]  ;;  %v205_v36 = vadd.f32 %v201_v26, %v190_v32  ;;  %v359_v37 = vadd.f32 %v355_v27, %v343_v33  ;;  %v968_v25 = vld [vmem:[#allocation2 + $0xb8] sm:$0xff]  ;;  %v814_v26 = vld [vmem:[#allocation2 + $0x90] sm:$0xff] }
 0x201   :  { %v1291_v35 = vld [vmem:[#allocation2 + $0x28] sm:$0xff]  ;;  %1319 = vst.msk [vmem:[#allocation5 + $0x8] sm:$0xff] %vm23_vm8, %v1287_v34  ;;  %v1286_v38 = vld [vmem:[#allocation2] sm:$0xff]  ;;  %211 = vst.msk [vmem:[#allocation2 + $0x18] sm:$0xff] %vm23_vm8, %v206_v30 }
 0x202   :  { %1323 = vst.msk [vmem:[#allocation5 + $0x28] sm:$0xff] %vm23_vm8, %v1291_v35  ;;  %v1290_v39 = vld [vmem:[#allocation2 + $0x20] sm:$0xff]  ;;  %364 = vst.msk [vmem:[#allocation2 + $0x38] sm:$0xff] %vm23_vm8, %v360_v31  ;;  %v967_v27 = vld [vmem:[#allocation2 + $0xb0] sm:$0xff] }
 0x203   :  { %1318 = vst.msk [vmem:[#allocation5] sm:$0xff] %vm23_vm8, %v1286_v38  ;;  %1322 = vst.msk [vmem:[#allocation5 + $0x20] sm:$0xff] %vm23_vm8, %v1290_v39 }
 0x204   :  { %210 = vst.msk [vmem:[#allocation2 + $0x10] sm:$0xff] %vm23_vm8, %v205_v36  ;;  %363 = vst.msk [vmem:[#allocation2 + $0x30] sm:$0xff] %vm23_vm8, %v359_v37 }
 0x206   :  { %v1465_v44 = vpop.f32.mrb[4].mxu0  ;;  %v1473_v45 = vpop.f32.mrb[4].mxu1 }
 0x207   :  { %v511_v46 = vadd.f32 %v1465_v44, %v507_v40  ;;  %v664_v47 = vadd.f32 %v1473_v45, %v660_v41  ;;  %v486_v48 = vpop.f32.mrb[5].mxu0  ;;  %v639_v49 = vpop.f32.mrb[5].mxu1  ;;  %v1119_v40 = vld [vmem:[#allocation2 + $0xc8] sm:$0xff] }
 0x208   :  { %v1289_v50 = vld [vmem:[#allocation2 + $0x18] sm:$0xff]  ;;  %v510_v52 = vadd.f32 %v506_v42, %v486_v48  ;;  %v663_v53 = vadd.f32 %v659_v43, %v639_v49  ;;  %v1272_v41 = vld [vmem:[#allocation2 + $0xe8] sm:$0xff]  ;;  %v1118_v42 = vld [vmem:[#allocation2 + $0xc0] sm:$0xff] }
 0x209   :  { %v1293_v51 = vld [vmem:[#allocation2 + $0x38] sm:$0xff]  ;;  %1321 = vst.msk [vmem:[#allocation5 + $0x18] sm:$0xff] %vm23_vm8, %v1289_v50  ;;  %515 = vst.msk [vmem:[#allocation2 + $0x48] sm:$0xff] %vm23_vm8, %v511_v46  ;;  %v1271_v43 = vld [vmem:[#allocation2 + $0xe0] sm:$0xff] }
 0x20a   :  { %1325 = vst.msk [vmem:[#allocation5 + $0x38] sm:$0xff] %vm23_vm8, %v1293_v51  ;;  %668 = vst.msk [vmem:[#allocation2 + $0x68] sm:$0xff] %vm23_vm8, %v664_v47 }
 0x20b   :  { %v1288_v54 = vld [vmem:[#allocation2 + $0x10] sm:$0xff]  ;;  %514 = vst.msk [vmem:[#allocation2 + $0x40] sm:$0xff] %vm23_vm8, %v510_v52  ;;  %667 = vst.msk [vmem:[#allocation2 + $0x60] sm:$0xff] %vm23_vm8, %v663_v53 }
 0x20c   :  { %v1292_v55 = vld [vmem:[#allocation2 + $0x30] sm:$0xff]  ;;  %1320 = vst.msk [vmem:[#allocation5 + $0x10] sm:$0xff] %vm23_vm8, %v1288_v54 }
 0x20d   :  { %1324 = vst.msk [vmem:[#allocation5 + $0x30] sm:$0xff] %vm23_vm8, %v1292_v55 }
 0x20e   :  { %v1468_v60 = vpop.f32.mrb[6].mxu0  ;;  %v1476_v61 = vpop.f32.mrb[6].mxu1 }
 0x20f   :  { %v513_v62 = vadd.f32 %v1468_v60, %v509_v56  ;;  %v666_v63 = vadd.f32 %v1476_v61, %v662_v57  ;;  %v496_v1 = vpop.f32.mrb[7].mxu0  ;;  %v649_v2 = vpop.f32.mrb[7].mxu1  ;;  %v1121_v56 = vld [vmem:[#allocation2 + $0xd8] sm:$0xff] }
 0x210   :  { %v1295_v3 = vld [vmem:[#allocation2 + $0x48] sm:$0xff]  ;;  %v512_v5 = vadd.f32 %v508_v58, %v496_v1  ;;  %v665_v6 = vadd.f32 %v661_v59, %v649_v2  ;;  %v1274_v57 = vld [vmem:[#allocation2 + $0xf8] sm:$0xff]  ;;  %v1120_v58 = vld [vmem:[#allocation2 + $0xd0] sm:$0xff] }
 0x211   :  { %v1299_v4 = vld [vmem:[#allocation2 + $0x68] sm:$0xff]  ;;  %1327 = vst.msk [vmem:[#allocation5 + $0x48] sm:$0xff] %vm23_vm8, %v1295_v3  ;;  %517 = vst.msk [vmem:[#allocation2 + $0x58] sm:$0xff] %vm23_vm8, %v513_v62  ;;  %v1273_v59 = vld [vmem:[#allocation2 + $0xf0] sm:$0xff] }
 0x212   :  { %1331 = vst.msk [vmem:[#allocation5 + $0x68] sm:$0xff] %vm23_vm8, %v1299_v4  ;;  %v1294_v7 = vld [vmem:[#allocation2 + $0x40] sm:$0xff]  ;;  %670 = vst.msk [vmem:[#allocation2 + $0x78] sm:$0xff] %vm23_vm8, %v666_v63 }
 0x213   :  { %v1298_v0 = vld [vmem:[#allocation2 + $0x60] sm:$0xff]  ;;  %1326 = vst.msk [vmem:[#allocation5 + $0x40] sm:$0xff] %vm23_vm8, %v1294_v7  ;;  %516 = vst.msk [vmem:[#allocation2 + $0x50] sm:$0xff] %vm23_vm8, %v512_v5 }
 0x214   :  { %1330 = vst.msk [vmem:[#allocation5 + $0x60] sm:$0xff] %vm23_vm8, %v1298_v0  ;;  %669 = vst.msk [vmem:[#allocation2 + $0x70] sm:$0xff] %vm23_vm8, %v665_v6 }
 0x216   :  { %v1481_v12 = vpop.f32.mrb[8].mxu0  ;;  %v1489_v13 = vpop.f32.mrb[8].mxu1 }
 0x217   :  { %v817_v14 = vadd.f32 %v1481_v12, %v813_v8  ;;  %v970_v15 = vadd.f32 %v1489_v13, %v966_v9  ;;  %v792_v16 = vpop.f32.mrb[9].mxu0  ;;  %v945_v17 = vpop.f32.mrb[9].mxu1 }
 0x218   :  { %v1297_v18 = vld [vmem:[#allocation2 + $0x58] sm:$0xff]  ;;  %v816_v20 = vadd.f32 %v812_v10, %v792_v16  ;;  %v969_v21 = vadd.f32 %v965_v11, %v945_v17 }
 0x219   :  { %v1301_v19 = vld [vmem:[#allocation2 + $0x78] sm:$0xff]  ;;  %1329 = vst.msk [vmem:[#allocation5 + $0x58] sm:$0xff] %vm23_vm8, %v1297_v18  ;;  %821 = vst.msk [vmem:[#allocation2 + $0x88] sm:$0xff] %vm23_vm8, %v817_v14 }
 0x21a   :  { %1333 = vst.msk [vmem:[#allocation5 + $0x78] sm:$0xff] %vm23_vm8, %v1301_v19  ;;  %v1296_v22 = vld [vmem:[#allocation2 + $0x50] sm:$0xff]  ;;  %974 = vst.msk [vmem:[#allocation2 + $0xa8] sm:$0xff] %vm23_vm8, %v970_v15 }
 0x21b   :  { %v1300_v23 = vld [vmem:[#allocation2 + $0x70] sm:$0xff]  ;;  %1328 = vst.msk [vmem:[#allocation5 + $0x50] sm:$0xff] %vm23_vm8, %v1296_v22  ;;  %820 = vst.msk [vmem:[#allocation2 + $0x80] sm:$0xff] %vm23_vm8, %v816_v20 }
 0x21c   :  { %1332 = vst.msk [vmem:[#allocation5 + $0x70] sm:$0xff] %vm23_vm8, %v1300_v23  ;;  %973 = vst.msk [vmem:[#allocation2 + $0xa0] sm:$0xff] %vm23_vm8, %v969_v21 }
 0x21e   :  { %v1484_v28 = vpop.f32.mrb[10].mxu0  ;;  %v1492_v29 = vpop.f32.mrb[10].mxu1 }
 0x21f   :  { %v819_v30 = vadd.f32 %v1484_v28, %v815_v24  ;;  %v972_v31 = vadd.f32 %v1492_v29, %v968_v25  ;;  %v802_v32 = vpop.f32.mrb[11].mxu0  ;;  %v955_v33 = vpop.f32.mrb[11].mxu1 }
 0x220   :  { %v1303_v34 = vld [vmem:[#allocation2 + $0x88] sm:$0xff]  ;;  %v818_v36 = vadd.f32 %v814_v26, %v802_v32  ;;  %v971_v37 = vadd.f32 %v967_v27, %v955_v33 }
 0x221   :  { %v1307_v35 = vld [vmem:[#allocation2 + $0xa8] sm:$0xff]  ;;  %1335 = vst.msk [vmem:[#allocation5 + $0x88] sm:$0xff] %vm23_vm8, %v1303_v34  ;;  %823 = vst.msk [vmem:[#allocation2 + $0x98] sm:$0xff] %vm23_vm8, %v819_v30 }
 0x222   :  { %1339 = vst.msk [vmem:[#allocation5 + $0xa8] sm:$0xff] %vm23_vm8, %v1307_v35  ;;  %v1302_v38 = vld [vmem:[#allocation2 + $0x80] sm:$0xff]  ;;  %976 = vst.msk [vmem:[#allocation2 + $0xb8] sm:$0xff] %vm23_vm8, %v972_v31 }
 0x223   :  { %v1306_v39 = vld [vmem:[#allocation2 + $0xa0] sm:$0xff]  ;;  %1334 = vst.msk [vmem:[#allocation5 + $0x80] sm:$0xff] %vm23_vm8, %v1302_v38  ;;  %822 = vst.msk [vmem:[#allocation2 + $0x90] sm:$0xff] %vm23_vm8, %v818_v36 }
 0x224   :  { %1338 = vst.msk [vmem:[#allocation5 + $0xa0] sm:$0xff] %vm23_vm8, %v1306_v39  ;;  %975 = vst.msk [vmem:[#allocation2 + $0xb0] sm:$0xff] %vm23_vm8, %v971_v37 }
 0x226   :  { %v1497_v44 = vpop.f32.mrb[12].mxu0  ;;  %v1505_v45 = vpop.f32.mrb[12].mxu1 }
 0x227   :  { %v1123_v46 = vadd.f32 %v1497_v44, %v1119_v40  ;;  %v1276_v47 = vadd.f32 %v1505_v45, %v1272_v41  ;;  %v1098_v48 = vpop.f32.mrb[13].mxu0  ;;  %v1251_v49 = vpop.f32.mrb[13].mxu1 }
 0x228   :  { %v1305_v50 = vld [vmem:[#allocation2 + $0x98] sm:$0xff]  ;;  %v1122_v52 = vadd.f32 %v1118_v42, %v1098_v48  ;;  %v1275_v53 = vadd.f32 %v1271_v43, %v1251_v49 }
 0x229   :  { %v1309_v51 = vld [vmem:[#allocation2 + $0xb8] sm:$0xff]  ;;  %1337 = vst.msk [vmem:[#allocation5 + $0x98] sm:$0xff] %vm23_vm8, %v1305_v50  ;;  %1127 = vst.msk [vmem:[#allocation2 + $0xc8] sm:$0xff] %vm23_vm8, %v1123_v46 }
 0x22a   :  { %1341 = vst.msk [vmem:[#allocation5 + $0xb8] sm:$0xff] %vm23_vm8, %v1309_v51  ;;  %v1304_v54 = vld [vmem:[#allocation2 + $0x90] sm:$0xff]  ;;  %1280 = vst.msk [vmem:[#allocation2 + $0xe8] sm:$0xff] %vm23_vm8, %v1276_v47 }
 0x22b   :  { %v1308_v55 = vld [vmem:[#allocation2 + $0xb0] sm:$0xff]  ;;  %1336 = vst.msk [vmem:[#allocation5 + $0x90] sm:$0xff] %vm23_vm8, %v1304_v54  ;;  %1126 = vst.msk [vmem:[#allocation2 + $0xc0] sm:$0xff] %vm23_vm8, %v1122_v52 }
 0x22c   :  { %1340 = vst.msk [vmem:[#allocation5 + $0xb0] sm:$0xff] %vm23_vm8, %v1308_v55  ;;  %1279 = vst.msk [vmem:[#allocation2 + $0xe0] sm:$0xff] %vm23_vm8, %v1275_v53 }
 0x22e   :  { %v1500_v60 = vpop.f32.mrb[14].mxu0  ;;  %v1508_v61 = vpop.f32.mrb[14].mxu1 }
 0x22f   :  { %v1125_v62 = vadd.f32 %v1500_v60, %v1121_v56  ;;  %v1278_v63 = vadd.f32 %v1508_v61, %v1274_v57  ;;  %v1108_v1 = vpop.f32.mrb[15].mxu0  ;;  %v1261_v2 = vpop.f32.mrb[15].mxu1 }
 0x230   :  { %v1311_v3 = vld [vmem:[#allocation2 + $0xc8] sm:$0xff]  ;;  %v1124_v5 = vadd.f32 %v1120_v58, %v1108_v1  ;;  %v1277_v6 = vadd.f32 %v1273_v59, %v1261_v2 }
 0x231   :  { %v1315_v4 = vld [vmem:[#allocation2 + $0xe8] sm:$0xff]  ;;  %1343 = vst.msk [vmem:[#allocation5 + $0xc8] sm:$0xff] %vm23_vm8, %v1311_v3  ;;  %1129 = vst.msk [vmem:[#allocation2 + $0xd8] sm:$0xff] %vm23_vm8, %v1125_v62 }
 0x232   :  { %1347 = vst.msk [vmem:[#allocation5 + $0xe8] sm:$0xff] %vm23_vm8, %v1315_v4  ;;  %v1310_v7 = vld [vmem:[#allocation2 + $0xc0] sm:$0xff]  ;;  %1282 = vst.msk [vmem:[#allocation2 + $0xf8] sm:$0xff] %vm23_vm8, %v1278_v63 }
 0x233   :  { %v1314_v0 = vld [vmem:[#allocation2 + $0xe0] sm:$0xff]  ;;  %1342 = vst.msk [vmem:[#allocation5 + $0xc0] sm:$0xff] %vm23_vm8, %v1310_v7  ;;  %1128 = vst.msk [vmem:[#allocation2 + $0xd0] sm:$0xff] %vm23_vm8, %v1124_v5 }
 0x234   :  { %1346 = vst.msk [vmem:[#allocation5 + $0xe0] sm:$0xff] %vm23_vm8, %v1314_v0  ;;  %1281 = vst.msk [vmem:[#allocation2 + $0xf0] sm:$0xff] %vm23_vm8, %v1277_v6 }
 0x238   :  { %v1313_v8 = vld [vmem:[#allocation2 + $0xd8] sm:$0xff] }
 0x239   :  { %v1317_v9 = vld [vmem:[#allocation2 + $0xf8] sm:$0xff]  ;;  %1345 = vst.msk [vmem:[#allocation5 + $0xd8] sm:$0xff] %vm23_vm8, %v1313_v8 }
 0x23a   :  { %1349 = vst.msk [vmem:[#allocation5 + $0xf8] sm:$0xff] %vm23_vm8, %v1317_v9  ;;  %v1312_v10 = vld [vmem:[#allocation2 + $0xd0] sm:$0xff] }
 0x23b   :  { %v1316_v11 = vld [vmem:[#allocation2 + $0xf0] sm:$0xff]  ;;  %1344 = vst.msk [vmem:[#allocation5 + $0xd0] sm:$0xff] %vm23_vm8, %v1312_v10 }
 0x23c   :  { %1348 = vst.msk [vmem:[#allocation5 + $0xf0] sm:$0xff] %vm23_vm8, %v1316_v11 }
 0x23d   :  { %1560 = shalt.err (!%p1557_p9)
}
 0x23e   :  { %s1561_s4 = scalar_lea.hbm %s1819_s3, 4096 }
 0x23f   :  { %p1562_p10 = scmp.ne.s32.totalorder %s1819_s3, %s1561_s4  ;;  %p1565_p11 = scmp.lt.u32.totalorder %s1561_s4, %s1819_s3 }
 0x241   :  { %p1567_p12 = pnand %p1565_p11, %p1562_p10 }
 0x243   :  { %1570 = shalt.err (!%p1567_p12)
}
 0x244   :  { %s1579_s9 = smov 128   ;;  %s1580_s10 = smov 8  }
 0x245   :  { %1361 = dma.vmem_to_hbm [thread:$0]  %s1356_s27, 4096, %s1819_s3, [#allocation6], %s1579_s9, %s1579_s9, %s1580_s10  }
 0x246   :  { %1573 = dma.done.wait [#allocation6], 4096  }
 0x247   :  { %1574 = vsyncadd [#allocation6], 4294963200 }
 0x248   :  { %1365 = vsyncpa [#allocation6], 1 }

</bundles_post_ra>
